<compile_context>
chip_gen: v7x
topology: tpu7x:2x2x1
jax: 0.10.0
libtpu: 0.0.40
codegen_flags: <defaults>
</compile_context>

<pallas_src>
import functools
import math

import jax
import jax.numpy as jnp
from jax import lax
from jax.experimental import pallas as pl
from jax.experimental.pallas import tpu as pltpu


def _signed32(v):
    """Python int -> equivalent int32 two's-complement value."""
    v &= 0xFFFFFFFF
    return v - (1 << 32) if v >= (1 << 31) else v


# lowbias32 (Wellons) integer-avalanche constants, as signed 32-bit Python ints.
_HASH_C1 = _signed32(0x7FEB352D)
_HASH_C2 = _signed32(0x846CA68B)

# Giles (2010) single-precision erfinv, central branch (valid for w < 5),
# Horner coefficients from highest degree to constant term.
_GILES_CENTRAL = (
    2.81022636e-08, 3.43273939e-07, -3.5233877e-06, -4.39150654e-06,
    0.00021858087, -0.00125372503, -0.00417768164, 0.246640727, 1.50140941,
)


def _hash_seed(seed):
    """lowbias32 of the user seed, done host-side: zero kernel ops and it
    decorrelates nearby seeds (their counter streams start far apart)."""
    v = int(seed) & 0xFFFFFFFF
    v ^= v >> 16
    v = (v * 0x7FEB352D) & 0xFFFFFFFF
    v ^= v >> 15
    v = (v * 0x846CA68B) & 0xFFFFFFFF
    v ^= v >> 16
    return _signed32(v)


def _lsr(v, k):
    """Logical right shift of an int32 array -- a single VPU op."""
    return lax.shift_right_logical(v, jnp.int32(k))


def _gaussian_noise_kernel(seed_ref, x_ref, o_ref, *, scaled_coefs):
    """o = x + std * z, z ~ N(0,1) from a stateless counter hash + inverse CDF."""
    br, lane = x_ref.shape

    # Global element counter for this tile.  Grid offset and (pre-hashed) seed
    # are folded into ONE scalar (scalar-ALU slot) before broadcasting.
    base = pl.program_id(0) * (br * lane) + seed_ref[0]
    r = lax.broadcasted_iota(jnp.int32, (br, lane), 0)
    c = lax.broadcasted_iota(jnp.int32, (br, lane), 1)
    v = base + r * lane + c

    # lowbias32 avalanche: 2 muls + 3 xor-shifts, all single int32 VPU ops.
    v = v ^ _lsr(v, 16)
    v = v * _HASH_C1
    v = v ^ _lsr(v, 15)
    v = v * _HASH_C2
    v = v ^ _lsr(v, 16)

    # Top 23 bits -> uniform strictly inside (-1, 1); the (+0.5, *2^-23, *2, -1)
    # chain is folded into a single mul + add.
    bits = _lsr(v, 9).astype(jnp.float32)
    arg = bits * jnp.float32(2.0 ** -22) + jnp.float32(2.0 ** -23 - 1.0)

    # Inverse-CDF transform: central branch of Giles' erfinv only (tail branch
    # dropped per perf review).  w clamped at 5 => noise clamped at ~±2.9*std
    # (~0.37% of samples) -- acceptable for a noise layer.
    w = jnp.minimum(-jnp.log(1.0 - arg * arg), jnp.float32(5.0))
    ws = w - jnp.float32(2.5)
    p = jnp.float32(scaled_coefs[0])
    for coef in scaled_coefs[1:]:
        p = jnp.float32(coef) + p * ws
    noise = p * arg            # scaled_coefs carry std*sqrt(2) -> this is std * z

    # TODO(synk): bf16 compute path for bf16 inputs on v6e/v7x (packed vregs give
    # ~2x VALU throughput); f32 kept here for accuracy and v5e (no bf16 VPU/EUP).
    o_ref[...] = (x_ref[...].astype(jnp.float32) + noise).astype(o_ref.dtype)


def _pick_block_rows(rows, block_rows):
    """Block height: a multiple-of-8 divisor of `rows` (exact grid, no ragged
    last block), as large as the VMEM budget allows, preferring >= 2 grid steps
    so v7x's two TensorCores both get work on the 'parallel' axis."""
    if rows <= block_rows:
        if rows >= 16 and rows % 16 == 0:
            return rows // 2       # two blocks for the 2-TC v7x; harmless elsewhere
        return rows
    cap = min(block_rows, rows // 2)
    best = 8
    d = 8
    while d <= cap:
        if rows % d == 0:
            best = d
        d += 8
    return best


def gaussian_noise(x, std, seed=0, *, block_rows=1024):
    """X + normal(0, std): Pallas equivalent of torch.normal(zeros_like(X), std)."""
    total = x.size
    if total == 0:
        return x

    # Lane-dense slab: widest lane (multiple of 128, <= 1024) such that
    # (rows, lane) exactly factors `total` with rows a multiple of 8 -> the 2-D
    # reshape is metadata-only (NO jnp.pad / output-slice HBM round-trip).
    lane = 0
    for cand in (1024, 512, 256, 128):
        if total % (8 * cand) == 0:
            lane = cand
            break
    if lane == 0:
        # Tiny or ragged totals: not worth a kernel launch / would need padding.
        # TODO(synk): in-kernel masked tail store for large ragged sizes.
        noise = std * jax.random.normal(jax.random.PRNGKey(int(seed)), x.shape,
                                        jnp.float32)
        return (x.astype(jnp.float32) + noise).astype(x.dtype)

    rows = total // lane                     # multiple of 8 by construction
    x2 = x.reshape(rows, lane)               # pure metadata reshape

    block_rows = max(8, (block_rows // 8) * 8)
    br = _pick_block_rows(rows, block_rows)
    grid = rows // br

    seed_arr = jnp.asarray([_hash_seed(seed)], dtype=jnp.int32)
    scale = float(std) * math.sqrt(2.0)      # fold std*sqrt(2) into the polynomial
    scaled_coefs = tuple(c * scale for c in _GILES_CENTRAL)

    out = pl.pallas_call(
        functools.partial(_gaussian_noise_kernel, scaled_coefs=scaled_coefs),
        out_shape=jax.ShapeDtypeStruct((rows, lane), x.dtype),
        grid_spec=pltpu.PrefetchScalarGridSpec(
            num_scalar_prefetch=1,                        # hashed seed -> SMEM
            grid=(grid,),
            in_specs=[pl.BlockSpec((br, lane), lambda i, _s: (i, 0))],
            out_specs=pl.BlockSpec((br, lane), lambda i, _s: (i, 0)),
        ),
        compiler_params=pltpu.CompilerParams(
            # Stateless per-element noise -> grid steps are order independent;
            # "parallel" lets v7x shard across both TensorCores.
            dimension_semantics=("parallel",),
            # 1024x1024 f32 blocks, in+out double-buffered = 16 MiB; 32 MiB gives
            # headroom on every generation (v7x physical VMEM is 64 MiB/TC).
            vmem_limit_bytes=32 * 1024 * 1024,
        ),
    )(seed_arr, x2)

    return out.reshape(x.shape)


if __name__ == "__main__":
    key = jax.random.PRNGKey(0)
    B, C, H, W = 2, 4, 16, 16
    x = jax.random.normal(key, (B, C, H, W), dtype=jnp.float32)
    std = 0.1

    y = gaussian_noise(x, std, seed=0)
    y = jax.block_until_ready(y)

    assert y.shape == x.shape and y.dtype == x.dtype
    noise = y - x
    max_abs = float(jnp.max(jnp.abs(noise)))
    noise_std = float(jnp.std(noise))
    assert 0.0 < max_abs < 1.0, f"unexpected noise magnitude {max_abs}"
    assert 0.05 < noise_std < 0.2, f"unexpected noise std {noise_std}"

    print("KERNEL_OK")
</pallas_src>

<mosaic_0001>
module attributes {stable_mosaic.version = 11 : i64} {
  func.func @_gaussian_noise_kernel(%arg0: i32, %arg1: memref<1xi32, #tpu.memory_space<smem>>, %arg2: memref<8x256xf32, #tpu.memory_space<vmem>>, %arg3: memref<8x256xf32, #tpu.memory_space<vmem>>) attributes {dimension_semantics = [#tpu.dimension_semantics<parallel>], iteration_bounds = array<i64: 1>, scalar_prefetch = 1 : i64, scratch_operands = 0 : i64, tpu.core_type = #tpu.core_type<tc>, window_params = [{transform_indices = @transform_0, window_bounds = array<i64: 8, 256>}, {transform_indices = @transform_1, window_bounds = array<i64: 8, 256>}]} {
    %c2048_i32 = arith.constant 2048 : i32
    %0 = arith.muli %arg0, %c2048_i32 : i32
    %c0 = arith.constant 0 : index
    %1 = memref.load %arg1[%c0] : memref<1xi32, #tpu.memory_space<smem>>
    %2 = arith.addi %0, %1 : i32
    %3 = tpu.iota {dimensions = array<i32: 0>} : vector<8x256xi32>
    %4 = tpu.iota {dimensions = array<i32: 1>} : vector<8x256xi32>
    %c256_i32 = arith.constant 256 : i32
    %5 = vector.broadcast %c256_i32 : i32 to vector<8x256xi32>
    %6 = arith.muli %3, %5 : vector<8x256xi32>
    %7 = vector.broadcast %2 : i32 to vector<8x256xi32>
    %8 = arith.addi %7, %6 : vector<8x256xi32>
    %9 = arith.addi %8, %4 : vector<8x256xi32>
    %c16_i32 = arith.constant 16 : i32
    %10 = vector.broadcast %c16_i32 : i32 to vector<8x256xi32>
    %11 = arith.shrui %9, %10 : vector<8x256xi32>
    %12 = arith.xori %9, %11 : vector<8x256xi32>
    %c2146121005_i32 = arith.constant 2146121005 : i32
    %13 = vector.broadcast %c2146121005_i32 : i32 to vector<8x256xi32>
    %14 = arith.muli %12, %13 : vector<8x256xi32>
    %c15_i32 = arith.constant 15 : i32
    %15 = vector.broadcast %c15_i32 : i32 to vector<8x256xi32>
    %16 = arith.shrui %14, %15 : vector<8x256xi32>
    %17 = arith.xori %14, %16 : vector<8x256xi32>
    %c-2073254261_i32 = arith.constant -2073254261 : i32
    %18 = vector.broadcast %c-2073254261_i32 : i32 to vector<8x256xi32>
    %19 = arith.muli %17, %18 : vector<8x256xi32>
    %c16_i32_0 = arith.constant 16 : i32
    %20 = vector.broadcast %c16_i32_0 : i32 to vector<8x256xi32>
    %21 = arith.shrui %19, %20 : vector<8x256xi32>
    %22 = arith.xori %19, %21 : vector<8x256xi32>
    %c9_i32 = arith.constant 9 : i32
    %23 = vector.broadcast %c9_i32 : i32 to vector<8x256xi32>
    %24 = arith.shrui %22, %23 : vector<8x256xi32>
    %25 = arith.sitofp %24 : vector<8x256xi32> to vector<8x256xf32>
    %cst = arith.constant 2.38418579E-7 : f32
    %26 = vector.broadcast %cst : f32 to vector<8x256xf32>
    %27 = arith.mulf %25, %26 : vector<8x256xf32>
    %cst_1 = arith.constant -0.99999988 : f32
    %28 = vector.broadcast %cst_1 : f32 to vector<8x256xf32>
    %29 = arith.addf %27, %28 : vector<8x256xf32>
    %30 = arith.mulf %29, %29 : vector<8x256xf32>
    %cst_2 = arith.constant 1.000000e+00 : f32
    %31 = vector.broadcast %cst_2 : f32 to vector<8x256xf32>
    %32 = arith.subf %31, %30 : vector<8x256xf32>
    %33 = math.log %32 : vector<8x256xf32>
    %cst_3 = arith.constant 0.000000e+00 : f32
    %34 = vector.broadcast %cst_3 : f32 to vector<8x256xf32>
    %35 = arith.subf %34, %33 : vector<8x256xf32>
    %cst_4 = arith.constant 5.000000e+00 : f32
    %36 = vector.broadcast %cst_4 : f32 to vector<8x256xf32>
    %37 = arith.minimumf %35, %36 : vector<8x256xf32>
    %cst_5 = arith.constant 2.500000e+00 : f32
    %38 = vector.broadcast %cst_5 : f32 to vector<8x256xf32>
    %39 = arith.subf %37, %38 : vector<8x256xf32>
    %cst_6 = arith.constant 3.974260e-09 : f32
    %40 = vector.broadcast %cst_6 : f32 to vector<8x256xf32>
    %41 = arith.mulf %40, %39 : vector<8x256xf32>
    %cst_7 = arith.constant 4.85462657E-8 : f32
    %42 = vector.broadcast %cst_7 : f32 to vector<8x256xf32>
    %43 = arith.addf %42, %41 : vector<8x256xf32>
    %44 = arith.mulf %43, %39 : vector<8x256xf32>
    %cst_8 = arith.constant -4.98282247E-7 : f32
    %45 = vector.broadcast %cst_8 : f32 to vector<8x256xf32>
    %46 = arith.addf %45, %44 : vector<8x256xf32>
    %47 = arith.mulf %46, %39 : vector<8x256xf32>
    %cst_9 = arith.constant -6.21052834E-7 : f32
    %48 = vector.broadcast %cst_9 : f32 to vector<8x256xf32>
    %49 = arith.addf %48, %47 : vector<8x256xf32>
    %50 = arith.mulf %49, %39 : vector<8x256xf32>
    %cst_10 = arith.constant 3.09120041E-5 : f32
    %51 = vector.broadcast %cst_10 : f32 to vector<8x256xf32>
    %52 = arith.addf %51, %50 : vector<8x256xf32>
    %53 = arith.mulf %52, %39 : vector<8x256xf32>
    %cst_11 = arith.constant -1.77303489E-4 : f32
    %54 = vector.broadcast %cst_11 : f32 to vector<8x256xf32>
    %55 = arith.addf %54, %53 : vector<8x256xf32>
    %56 = arith.mulf %55, %39 : vector<8x256xf32>
    %cst_12 = arith.constant -5.90813404E-4 : f32
    %57 = vector.broadcast %cst_12 : f32 to vector<8x256xf32>
    %58 = arith.addf %57, %56 : vector<8x256xf32>
    %59 = arith.mulf %58, %39 : vector<8x256xf32>
    %cst_13 = arith.constant 0.0348802656 : f32
    %60 = vector.broadcast %cst_13 : f32 to vector<8x256xf32>
    %61 = arith.addf %60, %59 : vector<8x256xf32>
    %62 = arith.mulf %61, %39 : vector<8x256xf32>
    %cst_14 = arith.constant 0.212331355 : f32
    %63 = vector.broadcast %cst_14 : f32 to vector<8x256xf32>
    %64 = arith.addf %63, %62 : vector<8x256xf32>
    %65 = arith.mulf %64, %29 : vector<8x256xf32>
    %c0_15 = arith.constant 0 : index
    %c0_16 = arith.constant 0 : index
    %66 = vector.load %arg2[%c0_15, %c0_16] : memref<8x256xf32, #tpu.memory_space<vmem>>, vector<8x256xf32>
    %67 = arith.addf %66, %65 : vector<8x256xf32>
    %c0_17 = arith.constant 0 : index
    %c0_18 = arith.constant 0 : index
    %68 = vector.load %arg3[%c0_17, %c0_18] : memref<8x256xf32, #tpu.memory_space<vmem>>, vector<8x256xf32>
    tpu.vector_store %arg3[%c0_17, %c0_18], %67 {strides = array<i32>} : memref<8x256xf32, #tpu.memory_space<vmem>>, vector<8x256xf32>,
    return
  }
  func.func @transform_0(%arg0: i32, %arg1: memref<1xi32, #tpu.memory_space<smem>>) -> (i32, i32) {
    %c0_i32 = arith.constant 0 : i32
    %c0_i32_0 = arith.constant 0 : i32
    return %arg0, %c0_i32 : i32, i32
  }
  func.func @transform_1(%arg0: i32, %arg1: memref<1xi32, #tpu.memory_space<smem>>) -> (i32, i32) {
    %c0_i32 = arith.constant 0 : i32
    %c0_i32_0 = arith.constant 0 : i32
    return %arg0, %c0_i32 : i32, i32
  }
}

</mosaic_0001>

<bundles_post_ra>
// kernel: tpu_custom_call.1
= control target key start
LH: loop header
LB: loop body
LE: loop exit
PB: predicated region body
PF: predicated region fallthrough
CT: control target
= control target key end

     0   :  { %8 = vsyncpa [#allocation5], 0  ;;  %s229_s0 = inlined_call_operand.<no memory space> [shape: s32[1], index: 0, kind: input, shape index: {}]   ;;  %s230_s1 = inlined_call_operand.hbm [shape: f32[8,256], index: 1, kind: input, shape index: {}]   ;;  %s231_s2 = inlined_call_operand.hbm [shape: f32[8,256], index: 2, kind: output, shape index: {}]  }
   0x1   :  { %9 = vsyncpa [#allocation6], 0  ;;  %s185_s9 = smov [#allocation4]   ;;  %s137_s13 = scalar_lea.hbm %s230_s1, 256 }
   0x2   :  { %s16_s10 = sshll.u32 %s185_s9, 4  ;;  %p138_p0 = scmp.ne.s32.totalorder %s230_s1, %s137_s13  ;;  %s17_s10 = int_to_ptr.vmem [resolvable:$true] %s16_s10 }
   0x3   :  { %p141_p1 = scmp.lt.u32.totalorder %s137_s13, %s230_s1 }
   0x5   :  { %p143_p2 = pnand %p141_p1, %p138_p0 }
   0x7   :  { %146 = shalt.err (!%p143_p2)
}
   0x8   :  { %s147_s18 = scalar_lea.vmem %s17_s10, 256  ;;  %p152_p4 = scmp.lt.s32.totalorder %s17_s10, %s17_s10 }
   0x9   :  { %p148_p3 = scmp.ne.s32.totalorder %s17_s10, %s147_s18  ;;  %p153_p5 = scmp.lt.s32.totalorder %s147_s18, %s147_s18 }
   0xb   :  { %p154_p6 = por %p153_p5, %p152_p4 }
   0xd   :  { %p155_p7 = pnand %p154_p6, %p148_p3 }
   0xf   :  { %158 = shalt.err (!%p155_p7)
}
  0x10   :  { %19 = dma.hbm_to_vmem [thread:$0]  %s230_s1, 256, %s17_s10, [#allocation5]  }
  0x11   :  { %181 = dma.done.wait [#allocation5], 256  }
  0x12   :  { %182 = vsyncadd [#allocation5], 4294967040  ;;  %v26_v0 = vlaneseq  ;;  %v32_v3 = vstv %s229_s0  ;;  %s186_s0 = smov [#allocation7]  }
  0x13   :  { %s120_s1 = sshll.u32 %s186_s0, 4  ;;  %s121_s1 = int_to_ptr.vmem [resolvable:$true] %s120_s1 }
  0x14   :  { %v27_v1 = vshrl.u32 %v26_v0, 7  ;;  %v29_v2 = vand.u32 127, %v26_v0  ;;  %s159_s23 = scalar_lea.vmem %s121_s1, 256  ;;  %p164_p9 = scmp.lt.s32.totalorder %s121_s1, %s121_s1 }
  0x15   :  { %p160_p8 = scmp.ne.s32.totalorder %s121_s1, %s159_s23  ;;  %p165_p10 = scmp.lt.s32.totalorder %s159_s23, %s159_s23 }
  0x16   :  { %v31_v4 = vmul.u32 256, %v27_v1  ;;  %v30_v5 = vadd.s32 128, %v29_v2 }
  0x17   :  { %p166_p11 = por %p165_p10, %p164_p9 }
  0x18   :  { %v33_v6 = vadd.s32 %v32_v3, %v31_v4 }
  0x19   :  { %p167_p12 = pnand %p166_p11, %p160_p8 }
  0x1a   :  { %v34_v7 = vadd.s32 %v33_v6, %v29_v2  ;;  %v35_v8 = vadd.s32 %v33_v6, %v30_v5 }
  0x1c   :  { %v36_v9 = vshrl.u32 %v34_v7, 16  ;;  %v37_v10 = vshrl.u32 %v35_v8, 16 }
  0x1e   :  { %v38_v11 = vxor.u32 %v36_v9, %v34_v7  ;;  %v39_v12 = vxor.u32 %v37_v10, %v35_v8 }
  0x20   :  { %v40_v13 = vmul.u32 2146121005, %v38_v11  ;;  %v41_v14 = vmul.u32 2146121005, %v39_v12 }
  0x22   :  { %v42_v15 = vshrl.u32 %v40_v13, 15  ;;  %v43_v16 = vshrl.u32 %v41_v14, 15 }
  0x24   :  { %v44_v17 = vxor.u32 %v42_v15, %v40_v13  ;;  %v45_v18 = vxor.u32 %v43_v16, %v41_v14  ;;  %v108_v14 = vld [vmem:[#allocation4] sm:$0xff] }
  0x26   :  { %v46_v19 = vmul.u32 2221713035, %v44_v17  ;;  %v47_v20 = vmul.u32 2221713035, %v45_v18  ;;  %v109_v17 = vld [vmem:[#allocation4 + $0x8] sm:$0xff] }
  0x28   :  { %v48_v21 = vshrl.u32 %v46_v19, 16  ;;  %v49_v22 = vshrl.u32 %v47_v20, 16 }
  0x2a   :  { %v50_v23 = vxor.u32 %v48_v21, %v46_v19  ;;  %v51_v24 = vxor.u32 %v49_v22, %v47_v20 }
  0x2c   :  { %v52_v25 = vshrl.u32 %v50_v23, 9  ;;  %v53_v26 = vshrl.u32 %v51_v24, 9 }
  0x2e   :  { %v54_v27 = vcvt.s32.f32 %v52_v25  ;;  %v55_v28 = vcvt.s32.f32 %v53_v26 }
  0x30   :  { %v56_v29 = vmul.f32 2.3841858e-07, %v54_v27  ;;  %v57_v30 = vmul.f32 2.3841858e-07, %v55_v28 }
  0x32   :  { %v58_v31 = vadd.f32 -0.9999999, %v56_v29  ;;  %v59_v32 = vadd.f32 -0.9999999, %v57_v30 }
  0x34   :  { %v60_v33 = vmul.f32 %v58_v31, %v58_v31  ;;  %v61_v34 = vmul.f32 %v59_v32, %v59_v32 }
  0x36   :  { %v62_v35 = vsub.f32 1.0, %v60_v33  ;;  %v63_v36 = vsub.f32 1.0, %v61_v34 }
  0x38   :  { %133 = vlog2.f32 %v62_v35 }
  0x39   :  { %135 = vlog2.f32 %v63_v36 }
  0x42   :  { %v134_v37 = vpop.eup %133 }
  0x43   :  { %v136_v38 = vpop.eup %135  ;;  %v65_v39 = vmul.f32 0.6931472, %v134_v37 }
  0x44   :  { %v67_v40 = vmul.f32 0.6931472, %v136_v38 }
  0x45   :  { %v68_v41 = vsub.f32 0.0, %v65_v39 }
  0x46   :  { %v69_v42 = vsub.f32 0.0, %v67_v40 }
  0x47   :  { %v70_v43 = vmin.f32 %v68_v41, 5.0 }
  0x48   :  { %v71_v44 = vmin.f32 %v69_v42, 5.0 }
  0x49   :  { %v129_v45 = vadd.f32 -2.5, %v70_v43 }
  0x4a   :  { %v130_v46 = vadd.f32 -2.5, %v71_v44 }
  0x4b   :  { %v74_v47 = vmul.f32 3.97426e-09, %v129_v45 }
  0x4c   :  { %v75_v48 = vmul.f32 3.97426e-09, %v130_v46 }
  0x4d   :  { %v76_v49 = vadd.f32 4.8546266e-08, %v74_v47 }
  0x4e   :  { %v77_v50 = vadd.f32 4.8546266e-08, %v75_v48 }
  0x4f   :  { %v78_v51 = vmul.f32 %v129_v45, %v76_v49 }
  0x50   :  { %v79_v52 = vmul.f32 %v130_v46, %v77_v50 }
  0x51   :  { %v80_v53 = vadd.f32 -4.9828225e-07, %v78_v51 }
  0x52   :  { %v81_v54 = vadd.f32 -4.9828225e-07, %v79_v52 }
  0x53   :  { %v82_v55 = vmul.f32 %v129_v45, %v80_v53 }
  0x54   :  { %v83_v56 = vmul.f32 %v130_v46, %v81_v54 }
  0x55   :  { %v84_v57 = vadd.f32 -6.2105283e-07, %v82_v55 }
  0x56   :  { %v85_v58 = vadd.f32 -6.2105283e-07, %v83_v56 }
  0x57   :  { %v86_v59 = vmul.f32 %v129_v45, %v84_v57 }
  0x58   :  { %v87_v60 = vmul.f32 %v130_v46, %v85_v58 }
  0x59   :  { %v88_v61 = vadd.f32 3.0912004e-05, %v86_v59 }
  0x5a   :  { %v89_v62 = vadd.f32 3.0912004e-05, %v87_v60 }
  0x5b   :  { %v90_v63 = vmul.f32 %v129_v45, %v88_v61 }
  0x5c   :  { %v91_v0 = vmul.f32 %v130_v46, %v89_v62 }
  0x5d   :  { %v92_v1 = vadd.f32 -0.00017730349, %v90_v63 }
  0x5e   :  { %v93_v2 = vadd.f32 -0.00017730349, %v91_v0 }
  0x5f   :  { %v94_v3 = vmul.f32 %v129_v45, %v92_v1 }
  0x60   :  { %v95_v4 = vmul.f32 %v130_v46, %v93_v2 }
  0x61   :  { %v96_v5 = vadd.f32 -0.0005908134, %v94_v3 }
  0x62   :  { %v97_v6 = vadd.f32 -0.0005908134, %v95_v4 }
  0x63   :  { %v98_v7 = vmul.f32 %v129_v45, %v96_v5 }
  0x64   :  { %v99_v8 = vmul.f32 %v130_v46, %v97_v6 }
  0x65   :  { %v100_v9 = vadd.f32 0.034880266, %v98_v7 }
  0x66   :  { %v101_v10 = vadd.f32 0.034880266, %v99_v8 }
  0x67   :  { %v102_v11 = vmul.f32 %v129_v45, %v100_v9 }
  0x68   :  { %v103_v12 = vmul.f32 %v130_v46, %v101_v10 }
  0x69   :  { %v104_v13 = vadd.f32 0.21233135, %v102_v11 }
  0x6a   :  { %v105_v15 = vadd.f32 0.21233135, %v103_v12 }
  0x6b   :  { %v106_v16 = vmul.f32 %v104_v13, %v58_v31 }
  0x6c   :  { %v107_v18 = vmul.f32 %v105_v15, %v59_v32 }
  0x6d   :  { %v110_v19 = vadd.f32 %v108_v14, %v106_v16 }
  0x6e   :  { %v111_v20 = vadd.f32 %v109_v17, %v107_v18 }
  0x6f   :  { %112 = vst [vmem:[#allocation7] sm:$0xff] %v110_v19 }
  0x70   :  { %113 = vst [vmem:[#allocation7 + $0x8] sm:$0xff] %v111_v20 }
  0x71   :  { %170 = shalt.err (!%p167_p12)
}
  0x72   :  { %s171_s26 = scalar_lea.hbm %s231_s2, 256 }
  0x73   :  { %p172_p13 = scmp.ne.s32.totalorder %s231_s2, %s171_s26  ;;  %p175_p0 = scmp.lt.u32.totalorder %s171_s26, %s231_s2 }
  0x75   :  { %p177_p1 = pnand %p175_p0, %p172_p13 }
  0x77   :  { %180 = shalt.err (!%p177_p1)
}
  0x78   :  { %123 = dma.vmem_to_hbm [thread:$0]  %s121_s1, 256, %s231_s2, [#allocation6]  }
  0x79   :  { %183 = dma.done.wait [#allocation6], 256  }
  0x7a   :  { %184 = vsyncadd [#allocation6], 4294967040 }
  0x7b   :  { %127 = vsyncpa [#allocation5], 1 }
  0x7c   :  { %128 = vsyncpa [#allocation6], 1 }

</bundles_post_ra>
